<compile_context>
chip_gen: v5e
topology: v5e:2x2
jax: 0.10.0
libtpu: 0.0.40
codegen_flags: <defaults>
</compile_context>

<pallas_src>
import jax
import jax.numpy as jnp
from jax.experimental import pallas as pl
from jax.experimental.pallas import tpu as pltpu

RNN = 512       # rnn_size (fixed in the PyTorch module)
ATT_HID = 196   # att_hid_size (fixed in the PyTorch module)


# --------------------------------------------------------------------------- #
# Kernel
# --------------------------------------------------------------------------- #
def attention_kernel(h_ref, att_feats_ref, p_att_ref,
                     w_h2att_ref, b_h2att_ref, w_alpha_ref, out_ref):
    # h: (bb, 1, 512) -> (bb, 512)
    h = h_ref[...][:, 0, :]
    # Upcast the bf16 streams to f32 for tanh / softmax / accumulation
    # (v5e VPU/EUP have no bf16 arithmetic).
    att_feats = att_feats_ref[...].astype(jnp.float32)      # (bb, A, 512)
    p_att = p_att_ref[...].astype(jnp.float32)               # (bb, A, 196)

    # h2att projection on the MXU with the VMEM-resident weight.
    att_h = (jnp.dot(h, w_h2att_ref[...], preferred_element_type=jnp.float32)
             + b_h2att_ref[...])                              # (bb, 196)

    dot = jnp.tanh(p_att + att_h[:, None, :])                 # (bb, A, 196)

    # alpha_net: broadcast-multiply + lane reduce, keeping A on the sublane axis.
    # (b_alpha omitted: softmax(x + c) == softmax(x).)
    scores = jnp.sum(dot * w_alpha_ref[...], axis=-1, keepdims=True)   # (bb, A, 1)

    # Softmax over the region (sublane) axis.
    m = jnp.max(scores, axis=1, keepdims=True)                # (bb, 1, 1)
    e = jnp.exp(scores - m)
    weight = e / jnp.sum(e, axis=1, keepdims=True)            # (bb, A, 1)

    # Weighted sum over regions -> (bb, 1, 512).
    out_ref[...] = jnp.sum(weight * att_feats, axis=1, keepdims=True)


# --------------------------------------------------------------------------- #
# Wrapper
# --------------------------------------------------------------------------- #
def _vmem_limit_bytes():
    """Generation-aware scoped-VMEM limit (~96 MiB on v5e/v6e, ~48 MiB on v7x)."""
    try:
        cap = pltpu.get_tpu_info().vmem_capacity_bytes
    except Exception:
        cap = 64 * 1024 * 1024          # conservative (v7x per-TC physical)
    return min(int(cap * 0.75), 100 * 1024 * 1024)


def _pick_block_b(B, cap):
    """Largest divisor of B <= cap; prefer an even number of grid steps (>=2)
    so the 'parallel' batch axis keeps both v7x TensorCores busy."""
    cap = max(1, min(B, cap))
    divisors = [d for d in range(1, cap + 1) if B % d == 0]
    even_grid = [d for d in divisors if (B // d) % 2 == 0]
    return max(even_grid) if even_grid else max(divisors)


def attention(h, att_feats, p_att_feats, kparams, *, max_block_b=256):
    B, A, R = att_feats.shape
    assert R == RNN and h.shape == (B, RNN)
    assert p_att_feats.shape == (B, A, ATT_HID)

    # h / out carried as (B, 1, 512): metadata-only reshape, keeps block layout legal
    # for any batch block size.
    h = h.astype(jnp.float32).reshape(B, 1, RNN)

    # Stream the two large activations in bf16.  In production the encoder should
    # already emit them in bf16 so no extra HBM pass happens here.
    if att_feats.dtype != jnp.bfloat16:
        att_feats = att_feats.astype(jnp.bfloat16)
    if p_att_feats.dtype != jnp.bfloat16:
        p_att_feats = p_att_feats.astype(jnp.bfloat16)

    vmem_limit = _vmem_limit_bytes()

    # Per-batch-row VMEM footprint: double-buffered I/O + f32 in-kernel temporaries.
    resident = 4 * (RNN * ATT_HID + 2 * ATT_HID)                       # weights/bias
    io_row = 2 * (4 * RNN + 2 * A * RNN + 2 * A * ATT_HID + 4 * RNN)   # 2x buffered
    scratch_row = 4 * A * (RNN + 2 * ATT_HID) + 64 * A                 # f32 upcasts etc.
    row_bytes = io_row + scratch_row
    bb_cap = int(max(1, (vmem_limit - resident - (4 << 20)) // row_bytes))
    bb = _pick_block_b(B, min(bb_cap, max_block_b))
    # TODO(synk): for prime/awkward B a masked tail block would beat bb=1; not
    # needed for typical batch sizes.

    grid = (B // bb,)

    out = pl.pallas_call(
        attention_kernel,
        out_shape=jax.ShapeDtypeStruct((B, 1, RNN), jnp.float32),
        grid=grid,
        in_specs=[
            pl.BlockSpec((bb, 1, RNN), lambda i: (i, 0, 0)),        # h (f32)
            pl.BlockSpec((bb, A, RNN), lambda i: (i, 0, 0)),        # att_feats (bf16)
            pl.BlockSpec((bb, A, ATT_HID), lambda i: (i, 0, 0)),    # p_att_feats (bf16)
            # Weights: constant block index -> fetched once, VMEM-resident across
            # all batch-grid steps.
            pl.BlockSpec((RNN, ATT_HID), lambda i: (0, 0)),         # W_h2att^T
            pl.BlockSpec((1, ATT_HID), lambda i: (0, 0)),           # b_h2att
            pl.BlockSpec((1, ATT_HID), lambda i: (0, 0)),           # w_alpha row
        ],
        out_specs=pl.BlockSpec((bb, 1, RNN), lambda i: (i, 0, 0)),
        compiler_params=pltpu.CompilerParams(
            dimension_semantics=("parallel",),     # megacore batch sharding on v7x
            vmem_limit_bytes=vmem_limit),
    )(h, att_feats, p_att_feats,
      kparams["w_h2att_t"], kparams["b_h2att"], kparams["w_alpha_row"])

    return out.reshape(B, RNN)


# --------------------------------------------------------------------------- #
# Parameters (deterministic, synthetic; PyTorch nn.Linear layouts)
# --------------------------------------------------------------------------- #
def init_params(key):
    def rnd(k, shape, scale=0.05):
        return jax.random.normal(k, shape, jnp.float32) * scale

    ks = jax.random.split(key, 4)
    return dict(
        w_h2att=rnd(ks[0], (ATT_HID, RNN)),   # nn.Linear(512, 196).weight
        b_h2att=rnd(ks[1], (ATT_HID,)),
        w_alpha=rnd(ks[2], (1, ATT_HID)),     # nn.Linear(196, 1).weight
        b_alpha=rnd(ks[3], (1,)),
    )


def prepare_kernel_params(p):
    """Transpose to (in, out); no padding needed (full-extent blocks)."""
    return dict(
        w_h2att_t=p["w_h2att"].T,                       # (512, 196)
        b_h2att=p["b_h2att"].reshape(1, ATT_HID),       # (1, 196)
        w_alpha_row=p["w_alpha"].reshape(1, ATT_HID),   # (1, 196)
        # b_alpha intentionally omitted: softmax is invariant to a constant shift.
    )


# --------------------------------------------------------------------------- #
# Pure-JAX reference (mirrors the PyTorch forward exactly, incl. b_alpha)
# --------------------------------------------------------------------------- #
def attention_ref(h, att_feats, p_att_feats, p):
    att_h = h @ p["w_h2att"].T + p["b_h2att"]                 # (B, 196)
    dot = jnp.tanh(p_att_feats + att_h[:, None, :])           # (B, A, 196)
    scores = jnp.einsum("bah,h->ba", dot, p["w_alpha"][0]) + p["b_alpha"][0]
    w = jax.nn.softmax(scores, axis=-1)                       # F.softmax -> last dim
    return jnp.einsum("ba,bar->br", w, att_feats)             # bmm weighted sum


if __name__ == "__main__":
    key = jax.random.PRNGKey(0)
    k_par, kh, ka, kp = jax.random.split(key, 4)
    params = init_params(k_par)
    kparams = prepare_kernel_params(params)

    B, A = 2, 6
    h = jax.random.normal(kh, (B, RNN), jnp.float32)
    att_feats = jax.random.normal(ka, (B, A, RNN), jnp.float32)
    p_att_feats = jax.random.normal(kp, (B, A, ATT_HID), jnp.float32)

    # Producer-side bf16 cast (what the encoder would emit in production).
    att_feats_bf16 = att_feats.astype(jnp.bfloat16)
    p_att_feats_bf16 = p_att_feats.astype(jnp.bfloat16)

    out = attention(h, att_feats_bf16, p_att_feats_bf16, kparams)
    jax.block_until_ready(out)
    assert out.shape == (B, RNN)

    # Exact-semantics check: reference on the same bf16-rounded activations.
    out_ref_q = attention_ref(h, att_feats_bf16.astype(jnp.float32),
                              p_att_feats_bf16.astype(jnp.float32), params)
    assert jnp.allclose(out, out_ref_q, atol=2e-3, rtol=2e-3), \
        float(jnp.max(jnp.abs(out - out_ref_q)))

    # Streaming-precision sanity check against the full-f32 module forward.
    out_ref_f32 = attention_ref(h, att_feats, p_att_feats, params)
    assert jnp.allclose(out, out_ref_f32, atol=5e-2, rtol=5e-2), \
        float(jnp.max(jnp.abs(out - out_ref_f32)))

    # TODO(synk): F.softmax in the PyTorch module uses the deprecated implicit dim
    # (== last dim for its 2-D input); that is what both kernel and reference do.
    print("KERNEL_OK")
</pallas_src>

<mosaic_0001>
module attributes {stable_mosaic.version = 11 : i64} {
  func.func @attention_kernel(%arg0: i32, %arg1: memref<1x1x512xf32, #tpu.memory_space<vmem>>, %arg2: memref<1x6x512xbf16, #tpu.memory_space<vmem>>, %arg3: memref<1x6x196xbf16, #tpu.memory_space<vmem>>, %arg4: memref<512x196xf32, #tpu.memory_space<vmem>>, %arg5: memref<1x196xf32, #tpu.memory_space<vmem>>, %arg6: memref<1x196xf32, #tpu.memory_space<vmem>>, %arg7: memref<1x1x512xf32, #tpu.memory_space<vmem>>) attributes {dimension_semantics = [#tpu.dimension_semantics<parallel>], iteration_bounds = array<i64: 2>, scalar_prefetch = 0 : i64, scratch_operands = 0 : i64, tpu.core_type = #tpu.core_type<tc>, window_params = [{transform_indices = @transform_0, window_bounds = array<i64: 1, 1, 512>}, {transform_indices = @transform_1, window_bounds = array<i64: 1, 6, 512>}, {transform_indices = @transform_2, window_bounds = array<i64: 1, 6, 196>}, {pipeline_mode = #tpu.pipeline_mode<synchronous>, transform_indices = @transform_3, window_bounds = array<i64: 512, 196>}, {pipeline_mode = #tpu.pipeline_mode<synchronous>, transform_indices = @transform_4, window_bounds = array<i64: 1, 196>}, {pipeline_mode = #tpu.pipeline_mode<synchronous>, transform_indices = @transform_5, window_bounds = array<i64: 1, 196>}, {transform_indices = @transform_6, window_bounds = array<i64: 1, 1, 512>}]} {
    %c0 = arith.constant 0 : index
    %c0_0 = arith.constant 0 : index
    %c0_1 = arith.constant 0 : index
    %0 = vector.load %arg1[%c0, %c0_0, %c0_1] : memref<1x1x512xf32, #tpu.memory_space<vmem>>, vector<1x1x512xf32>
    %1 = vector.shape_cast %0 : vector<1x1x512xf32> to vector<1x512xf32>
    %c0_2 = arith.constant 0 : index
    %c0_3 = arith.constant 0 : index
    %c0_4 = arith.constant 0 : index
    %2 = vector.load %arg2[%c0_2, %c0_3, %c0_4] : memref<1x6x512xbf16, #tpu.memory_space<vmem>>, vector<1x6x512xbf16>
    %3 = arith.extf %2 : vector<1x6x512xbf16> to vector<1x6x512xf32>
    %c0_5 = arith.constant 0 : index
    %c0_6 = arith.constant 0 : index
    %c0_7 = arith.constant 0 : index
    %4 = vector.load %arg3[%c0_5, %c0_6, %c0_7] : memref<1x6x196xbf16, #tpu.memory_space<vmem>>, vector<1x6x196xbf16>
    %5 = arith.extf %4 : vector<1x6x196xbf16> to vector<1x6x196xf32>
    %c0_8 = arith.constant 0 : index
    %c0_9 = arith.constant 0 : index
    %6 = vector.load %arg4[%c0_8, %c0_9] : memref<512x196xf32, #tpu.memory_space<vmem>>, vector<512x196xf32>
    %cst = arith.constant dense<0.000000e+00> : vector<1x196xf32>
    %7 = tpu.matmul %1, %6, %cst {dimension_numbers = #tpu.dot_dimension_numbers<[1], [0], [0], [1], [0, 0, 1, 1], [], []>} : vector<1x512xf32>, vector<512x196xf32>, vector<1x196xf32> -> vector<1x196xf32>
    %c0_10 = arith.constant 0 : index
    %c0_11 = arith.constant 0 : index
    %8 = vector.load %arg5[%c0_10, %c0_11] : memref<1x196xf32, #tpu.memory_space<vmem>>, vector<1x196xf32>
    %9 = arith.addf %7, %8 : vector<1x196xf32>
    %10 = vector.shape_cast %9 : vector<1x196xf32> to vector<1x1x196xf32>
    %11 = vector.broadcast %10 : vector<1x1x196xf32> to vector<1x6x196xf32>
    %12 = arith.addf %5, %11 : vector<1x6x196xf32>
    %13 = math.tanh %12 : vector<1x6x196xf32>
    %c0_12 = arith.constant 0 : index
    %c0_13 = arith.constant 0 : index
    %14 = vector.load %arg6[%c0_12, %c0_13] : memref<1x196xf32, #tpu.memory_space<vmem>>, vector<1x196xf32>
    %15 = vector.shape_cast %14 : vector<1x196xf32> to vector<1x1x196xf32>
    %16 = vector.broadcast %15 : vector<1x1x196xf32> to vector<1x6x196xf32>
    %17 = arith.mulf %13, %16 : vector<1x6x196xf32>
    %cst_14 = arith.constant dense<0.000000e+00> : vector<1x6xf32>
    %18 = vector.multi_reduction <add>, %17, %cst_14 [2] : vector<1x6x196xf32> to vector<1x6xf32>
    %19 = vector.shape_cast %18 : vector<1x6xf32> to vector<1x6x1xf32>
    %cst_15 = arith.constant dense<0xFF800000> : vector<1x1xf32>
    %20 = vector.multi_reduction <maximumf>, %19, %cst_15 [1] : vector<1x6x1xf32> to vector<1x1xf32>
    %21 = vector.shape_cast %20 : vector<1x1xf32> to vector<1x1x1xf32>
    %22 = vector.broadcast %21 : vector<1x1x1xf32> to vector<1x6x1xf32>
    %23 = arith.subf %19, %22 : vector<1x6x1xf32>
    %24 = math.exp %23 : vector<1x6x1xf32>
    %cst_16 = arith.constant dense<0.000000e+00> : vector<1x1xf32>
    %25 = vector.multi_reduction <add>, %24, %cst_16 [1] : vector<1x6x1xf32> to vector<1x1xf32>
    %26 = vector.shape_cast %25 : vector<1x1xf32> to vector<1x1x1xf32>
    %27 = vector.broadcast %26 : vector<1x1x1xf32> to vector<1x6x1xf32>
    %28 = arith.divf %24, %27 : vector<1x6x1xf32>
    %29 = vector.broadcast %28 : vector<1x6x1xf32> to vector<1x6x512xf32>
    %30 = arith.mulf %29, %3 : vector<1x6x512xf32>
    %cst_17 = arith.constant dense<0.000000e+00> : vector<1x512xf32>
    %31 = vector.multi_reduction <add>, %30, %cst_17 [1] : vector<1x6x512xf32> to vector<1x512xf32>
    %32 = vector.shape_cast %31 : vector<1x512xf32> to vector<1x1x512xf32>
    %c0_18 = arith.constant 0 : index
    %c0_19 = arith.constant 0 : index
    %c0_20 = arith.constant 0 : index
    %33 = vector.load %arg7[%c0_18, %c0_19, %c0_20] : memref<1x1x512xf32, #tpu.memory_space<vmem>>, vector<1x1x512xf32>
    tpu.vector_store %arg7[%c0_18, %c0_19, %c0_20], %32 {strides = array<i32>} : memref<1x1x512xf32, #tpu.memory_space<vmem>>, vector<1x1x512xf32>,
    return
  }
  func.func @transform_0(%arg0: i32) -> (i32, i32, i32) {
    %c0_i32 = arith.constant 0 : i32
    %c0_i32_0 = arith.constant 0 : i32
    %c0_i32_1 = arith.constant 0 : i32
    return %arg0, %c0_i32, %c0_i32_0 : i32, i32, i32
  }
  func.func @transform_1(%arg0: i32) -> (i32, i32, i32) {
    %c0_i32 = arith.constant 0 : i32
    %c0_i32_0 = arith.constant 0 : i32
    %c0_i32_1 = arith.constant 0 : i32
    return %arg0, %c0_i32, %c0_i32_0 : i32, i32, i32
  }
  func.func @transform_2(%arg0: i32) -> (i32, i32, i32) {
    %c0_i32 = arith.constant 0 : i32
    %c0_i32_0 = arith.constant 0 : i32
    %c0_i32_1 = arith.constant 0 : i32
    return %arg0, %c0_i32, %c0_i32_0 : i32, i32, i32
  }
  func.func @transform_3(%arg0: i32) -> (i32, i32) {
    %c0_i32 = arith.constant 0 : i32
    %c0_i32_0 = arith.constant 0 : i32
    %c0_i32_1 = arith.constant 0 : i32
    return %c0_i32, %c0_i32_0 : i32, i32
  }
  func.func @transform_4(%arg0: i32) -> (i32, i32) {
    %c0_i32 = arith.constant 0 : i32
    %c0_i32_0 = arith.constant 0 : i32
    %c0_i32_1 = arith.constant 0 : i32
    return %c0_i32, %c0_i32_0 : i32, i32
  }
  func.func @transform_5(%arg0: i32) -> (i32, i32) {
    %c0_i32 = arith.constant 0 : i32
    %c0_i32_0 = arith.constant 0 : i32
    %c0_i32_1 = arith.constant 0 : i32
    return %c0_i32, %c0_i32_0 : i32, i32
  }
  func.func @transform_6(%arg0: i32) -> (i32, i32, i32) {
    %c0_i32 = arith.constant 0 : i32
    %c0_i32_0 = arith.constant 0 : i32
    %c0_i32_1 = arith.constant 0 : i32
    return %arg0, %c0_i32, %c0_i32_0 : i32, i32, i32
  }
}

</mosaic_0001>

<bundles_post_ra>
// kernel: tpu_custom_call.1
= control target key start
LH: loop header
LB: loop body
LE: loop exit
PB: predicated region body
PF: predicated region fallthrough
CT: control target
= control target key end

     0   :  { %11 = vsyncpa [#allocation3], 0  ;;  %s1473_s0 = inlined_call_operand.vmem [shape: f32[2,1,512], index: 0, kind: input, shape index: {}]   ;;  %s1474_s1 = inlined_call_operand.vmem [shape: bf16[2,6,512], index: 1, kind: input, shape index: {}]   ;;  %s1475_s2 = inlined_call_operand.vmem [shape: bf16[2,6,196], index: 2, kind: input, shape index: {}]   ;;  %s1476_s3 = inlined_call_operand.vmem [shape: f32[512,196], index: 3, kind: input, shape index: {}]   ;;  %s1477_s4 = inlined_call_operand.vmem [shape: f32[1,196], index: 4, kind: input, shape index: {}]   ;;  %s1478_s5 = inlined_call_operand.vmem [shape: f32[1,196], index: 5, kind: input, shape index: {}]   ;;  %s1479_s6 = inlined_call_operand.hbm [shape: f32[2,1,512], index: 6, kind: output, shape index: {}]  }
   0x1   :  { %13 = vsyncpa [#allocation3 + $0x1], 0  ;;  %s965_s21 = smov 0   ;;  %s967_s22 = smov 0  }
   0x2   :  { %s969_s23 = smov 0   ;;  %s971_s24 = smov 0  }
   0x3 LB: > { %s986_s25 = sadd.s32 4294967295, %s928_s24   ;;  %s803_s26 = sadd.s32 4294967294, %s928_s24   ;;  %s928_s24 = sphi %s971_s24, %s1485_s24   ;;  %s924_s23 = sphi %s969_s23, %s1484_s23   ;;  %s920_s22 = sphi %s967_s22, %s1483_s22   ;;  %s916_s21 = sphi %s965_s21, %s1482_s21  }
   0x4   : > { %s990_s27 = sadd.s32 1, %s928_s24   ;;  %s167_s28 = sadd.s32 1, %s924_s23 }
   0x5   : > { %s164_s29 = ssub.s32 %s928_s24, %s990_s27  ;;  %p177_p0 = scmp.ne.s32.totalorder %s924_s23, %s920_s22 }
   0x6   : > { %p165_p1 = scmp.eq.s32.totalorder %s164_s29, 0  ;;  %p178_p2 = scmp.eq.s32.totalorder %s986_s25, 1 }
   0x7   : > { %p183_p3 = scmp.ne.s32.totalorder %s920_s22, %s916_s21  ;;  %p184_p4 = scmp.eq.s32.totalorder %s803_s26, 1 }
   0x8   : > { %s1001_s30 = scalar_select %p165_p1, %s924_s23, %s167_s28  }
   0x9   : > { %p1003_p5 = por %p178_p2, %p177_p0  ;;  %p1007_p6 = por %p184_p4, %p183_p3 }
   0xa   : > { %p806_p7 = scmp.ge.s32.totalorder %s928_s24, 1  ;;  %p234_p8 = scmp.lt.s32.totalorder %s928_s24, 3 }
   0xc   : > { %p235_p9 = pnand %p806_p7, %p234_p8 }
   0xd   : > { %p273_p10 = scmp.lt.s32.totalorder (!%p235_p9), %s986_s25, 1  ;;  %s814_s26 = sshll.u32 (!%p235_p9), %s986_s25, 2 }
   0xe   : > { %238 = sbr.rel (%p235_p9) target bundleno = 431 (0x1af), region = 44  ;;  %s886_s19 = scalar_lea.hbm (!%p235_p9), %s1479_s6, 8 }
  0x13   : > { %v391_v0 = vld [vmem:[%s1476_s3 + $0x2f0] sm:$0xff]  ;;  %v389_v2 = vld [vmem:[%s1476_s3 + $0x2e0] sm:$0xff]  ;;  %v392_v62 = vld [vmem:[%s1476_s3 + $0x2f8] sm:$0xff]  ;;  %s1263_s29 = scalar_select %p273_p10, %s986_s25, 1  ;;  %vm614_vm0 = vcmask 1045504   ;;  %vm616_vm1 = vcmask 553984  }
  0x14   : > { %v327_v1 = vld [vmem:[%s1476_s3 + $0xf0] sm:$0xff]  ;;  %480 = vmatpush.msra.mxu2 %v391_v0  ;;  %v325_v4 = vld [vmem:[%s1476_s3 + $0xe0] sm:$0xff]  ;;  %v328_v0 = vld [vmem:[%s1476_s3 + $0xf8] sm:$0xff]  ;;  %vm692_vm6 = vcmask 1040384   ;;  %vm694_vm7 = vcmask 1042434   ;;  %vm696_vm8 = vcmask 1041408  }
  0x15   : > { %440 = vmatpush.msra.mxu0 %v327_v1  ;;  %v423_v3 = vld [vmem:[%s1476_s3 + $0x3f0] sm:$0xff]  ;;  %v421_v7 = vld [vmem:[%s1476_s3 + $0x3e0] sm:$0xff]  ;;  %v424_v1 = vld [vmem:[%s1476_s3 + $0x3f8] sm:$0xff]  ;;  %s808_s11 = sshll.u32 %s1263_s29, 2  ;;  %s818_s9 = sshll.u32 %s1263_s29, 3 }
  0x16   : > { %v359_v5 = vld [vmem:[%s1476_s3 + $0x1f0] sm:$0xff]  ;;  %500 = vmatpush.msra.mxu3 %v423_v3  ;;  %481 = vmatpush.msra.mxu2 %v389_v2  ;;  %v357_v9 = vld [vmem:[%s1476_s3 + $0x1e0] sm:$0xff]  ;;  %v390_v2 = vld [vmem:[%s1476_s3 + $0x2e8] sm:$0xff]  ;;  %s276_s13 = scalar_lea.vmem %s1473_s0, %s808_s11  ;;  %s286_s14 = scalar_lea.vmem %s1475_s2, %s818_s9 }
  0x17   : > { %460 = vmatpush.msra.mxu1 %v359_v5  ;;  %v387_v6 = vld [vmem:[%s1476_s3 + $0x2d0] sm:$0xff]  ;;  %441 = vmatpush.msra.mxu0 %v325_v4  ;;  %v385_v11 = vld [vmem:[%s1476_s3 + $0x2c0] sm:$0xff]  ;;  %v326_v4 = vld [vmem:[%s1476_s3 + $0xe8] sm:$0xff]  ;;  %s817_s17 = sshll.u32 %s1263_s29, 4  ;;  %s270_s29 = sand.u32 1, %s920_s22  }
  0x18   : > { %v323_v8 = vld [vmem:[%s1476_s3 + $0xd0] sm:$0xff]  ;;  %501 = vmatpush.msra.mxu3 %v421_v7  ;;  %v321_v12 = vld [vmem:[%s1476_s3 + $0xc0] sm:$0xff]  ;;  %482 = vmatpush.msra.mxu2 %v387_v6  ;;  %v360_v5 = vld [vmem:[%s1476_s3 + $0x1f8] sm:$0xff]  ;;  %s281_s20 = scalar_lea.vmem %s1474_s1, %s817_s17  ;;  %s715_s9 = scalar_lea.hbm %s1479_s6, %s814_s26 }
  0x19   : > { %v419_v10 = vld [vmem:[%s1476_s3 + $0x3d0] sm:$0xff]  ;;  %461 = vmatpush.msra.mxu1 %v357_v9  ;;  %442 = vmatpush.msra.mxu0 %v323_v8  ;;  %v417_v14 = vld [vmem:[%s1476_s3 + $0x3c0] sm:$0xff]  ;;  %v388_v6 = vld [vmem:[%s1476_s3 + $0x2d8] sm:$0xff]  ;;  %s719_s12 = sshll.u32 %s715_s9, 4  ;;  %s720_s12 = int_to_ptr.hbm [resolvable:$true] %s719_s12 }
  0x1a   : > { %v355_v13 = vld [vmem:[%s1476_s3 + $0x1d0] sm:$0xff]  ;;  %v353_v15 = vld [vmem:[%s1476_s3 + $0x1c0] sm:$0xff]  ;;  %502 = vmatpush.msra.mxu3 %v419_v10  ;;  %483 = vmatpush.msra.mxu2 %v385_v11  ;;  %v422_v7 = vld [vmem:[%s1476_s3 + $0x3e8] sm:$0xff]  ;;  %s880_s15 = sshra.s32 %s720_s12, 4  ;;  %s881_s15 = int_to_ptr.hbm [resolvable:$true] %s880_s15 }
  0x1b   : > { %462 = vmatpush.msra.mxu1 %v355_v13  ;;  %v383_v16 = vld [vmem:[%s1476_s3 + $0x2b0] sm:$0xff]  ;;  %443 = vmatpush.msra.mxu0 %v321_v12  ;;  %v381_v20 = vld [vmem:[%s1476_s3 + $0x2a0] sm:$0xff]  ;;  %v324_v8 = vld [vmem:[%s1476_s3 + $0xd8] sm:$0xff]  ;;  %s882_s16 = scalar_lea.hbm %s881_s15, 4  ;;  %p887_p0 = scmp.lt.s32.totalorder %s881_s15, %s1479_s6 }
  0x1c   : > { %v319_v17 = vld [vmem:[%s1476_s3 + $0xb0] sm:$0xff]  ;;  %503 = vmatpush.msra.mxu3 %v417_v14  ;;  %v317_v21 = vld [vmem:[%s1476_s3 + $0xa0] sm:$0xff]  ;;  %484 = vmatpush.msra.mxu2 %v383_v16  ;;  %v358_v9 = vld [vmem:[%s1476_s3 + $0x1e8] sm:$0xff]  ;;  %p883_p11 = scmp.ne.s32.totalorder %s881_s15, %s882_s16  ;;  %p888_p1 = scmp.lt.s32.totalorder %s886_s19, %s882_s16 }
  0x1d   : > { %v415_v18 = vld [vmem:[%s1476_s3 + $0x3b0] sm:$0xff]  ;;  %463 = vmatpush.msra.mxu1 %v353_v15  ;;  %444 = vmatpush.msra.mxu0 %v319_v17  ;;  %v413_v22 = vld [vmem:[%s1476_s3 + $0x3a0] sm:$0xff]  ;;  %v386_v10 = vld [vmem:[%s1476_s3 + $0x2c8] sm:$0xff] }
  0x1e   : > { %v351_v19 = vld [vmem:[%s1476_s3 + $0x1b0] sm:$0xff]  ;;  %v349_v23 = vld [vmem:[%s1476_s3 + $0x1a0] sm:$0xff]  ;;  %504 = vmatpush.msra.mxu3 %v415_v18  ;;  %485 = vmatpush.msra.mxu2 %v381_v20  ;;  %v420_v11 = vld [vmem:[%s1476_s3 + $0x3d8] sm:$0xff]  ;;  %p884_p12 = pnand %p883_p11, %p1003_p5  ;;  %p889_p2 = por %p888_p1, %p887_p0 }
  0x1f   : > { %464 = vmatpush.msra.mxu1 %v351_v19  ;;  %v379_v24 = vld [vmem:[%s1476_s3 + $0x290] sm:$0xff]  ;;  %445 = vmatpush.msra.mxu0 %v317_v21  ;;  %v377_v28 = vld [vmem:[%s1476_s3 + $0x280] sm:$0xff]  ;;  %v322_v12 = vld [vmem:[%s1476_s3 + $0xc8] sm:$0xff] }
  0x20   : > { %v315_v25 = vld [vmem:[%s1476_s3 + $0x90] sm:$0xff]  ;;  %505 = vmatpush.msra.mxu3 %v413_v22  ;;  %v313_v29 = vld [vmem:[%s1476_s3 + $0x80] sm:$0xff]  ;;  %486 = vmatpush.msra.mxu2 %v379_v24  ;;  %v356_v13 = vld [vmem:[%s1476_s3 + $0x1d8] sm:$0xff]  ;;  %p885_p13 = pneg %p884_p12 }
  0x21   : > { %v411_v26 = vld [vmem:[%s1476_s3 + $0x390] sm:$0xff]  ;;  %465 = vmatpush.msra.mxu1 %v349_v23  ;;  %446 = vmatpush.msra.mxu0 %v315_v25  ;;  %v409_v30 = vld [vmem:[%s1476_s3 + $0x380] sm:$0xff]  ;;  %v384_v14 = vld [vmem:[%s1476_s3 + $0x2b8] sm:$0xff] }
  0x22   : > { %v347_v27 = vld [vmem:[%s1476_s3 + $0x190] sm:$0xff]  ;;  %v345_v31 = vld [vmem:[%s1476_s3 + $0x180] sm:$0xff]  ;;  %506 = vmatpush.msra.mxu3 %v411_v26  ;;  %487 = vmatpush.msra.mxu2 %v377_v28  ;;  %v418_v15 = vld [vmem:[%s1476_s3 + $0x3c8] sm:$0xff]  ;;  %p890_p3 = pnand %p889_p2, %p885_p13 }
  0x23   : > { %466 = vmatpush.msra.mxu1 %v347_v27  ;;  %v375_v32 = vld [vmem:[%s1476_s3 + $0x270] sm:$0xff]  ;;  %447 = vmatpush.msra.mxu0 %v313_v29  ;;  %v373_v36 = vld [vmem:[%s1476_s3 + $0x260] sm:$0xff]  ;;  %v320_v16 = vld [vmem:[%s1476_s3 + $0xb8] sm:$0xff] }
  0x24   : > { %v311_v33 = vld [vmem:[%s1476_s3 + $0x70] sm:$0xff]  ;;  %507 = vmatpush.msra.mxu3 %v409_v30  ;;  %v309_v37 = vld [vmem:[%s1476_s3 + $0x60] sm:$0xff]  ;;  %488 = vmatpush.msra.mxu2 %v375_v32  ;;  %v354_v17 = vld [vmem:[%s1476_s3 + $0x1c8] sm:$0xff] }
  0x25   : > { %v407_v34 = vld [vmem:[%s1476_s3 + $0x370] sm:$0xff]  ;;  %467 = vmatpush.msra.mxu1 %v345_v31  ;;  %448 = vmatpush.msra.mxu0 %v311_v33  ;;  %v405_v38 = vld [vmem:[%s1476_s3 + $0x360] sm:$0xff]  ;;  %v382_v18 = vld [vmem:[%s1476_s3 + $0x2a8] sm:$0xff] }
  0x26   : > { %v343_v35 = vld [vmem:[%s1476_s3 + $0x170] sm:$0xff]  ;;  %v341_v39 = vld [vmem:[%s1476_s3 + $0x160] sm:$0xff]  ;;  %508 = vmatpush.msra.mxu3 %v407_v34  ;;  %489 = vmatpush.msra.mxu2 %v373_v36  ;;  %v416_v19 = vld [vmem:[%s1476_s3 + $0x3b8] sm:$0xff] }
  0x27   : > { %468 = vmatpush.msra.mxu1 %v343_v35  ;;  %v371_v40 = vld [vmem:[%s1476_s3 + $0x250] sm:$0xff]  ;;  %449 = vmatpush.msra.mxu0 %v309_v37  ;;  %v369_v44 = vld [vmem:[%s1476_s3 + $0x240] sm:$0xff]  ;;  %v318_v20 = vld [vmem:[%s1476_s3 + $0xa8] sm:$0xff] }
  0x28   : > { %v307_v41 = vld [vmem:[%s1476_s3 + $0x50] sm:$0xff]  ;;  %509 = vmatpush.msra.mxu3 %v405_v38  ;;  %v305_v45 = vld [vmem:[%s1476_s3 + $0x40] sm:$0xff]  ;;  %490 = vmatpush.msra.mxu2 %v371_v40  ;;  %v352_v21 = vld [vmem:[%s1476_s3 + $0x1b8] sm:$0xff] }
  0x29   : > { %v403_v42 = vld [vmem:[%s1476_s3 + $0x350] sm:$0xff]  ;;  %469 = vmatpush.msra.mxu1 %v341_v39  ;;  %450 = vmatpush.msra.mxu0 %v307_v41  ;;  %v401_v46 = vld [vmem:[%s1476_s3 + $0x340] sm:$0xff]  ;;  %v380_v22 = vld [vmem:[%s1476_s3 + $0x298] sm:$0xff] }
  0x2a   : > { %v339_v43 = vld [vmem:[%s1476_s3 + $0x150] sm:$0xff]  ;;  %v337_v47 = vld [vmem:[%s1476_s3 + $0x140] sm:$0xff]  ;;  %510 = vmatpush.msra.mxu3 %v403_v42  ;;  %491 = vmatpush.msra.mxu2 %v369_v44  ;;  %v414_v23 = vld [vmem:[%s1476_s3 + $0x3a8] sm:$0xff] }
  0x2b   : > { %470 = vmatpush.msra.mxu1 %v339_v43  ;;  %v367_v48 = vld [vmem:[%s1476_s3 + $0x230] sm:$0xff]  ;;  %451 = vmatpush.msra.mxu0 %v305_v45  ;;  %v365_v52 = vld [vmem:[%s1476_s3 + $0x220] sm:$0xff]  ;;  %v316_v24 = vld [vmem:[%s1476_s3 + $0x98] sm:$0xff] }
  0x2c   : > { %v303_v49 = vld [vmem:[%s1476_s3 + $0x30] sm:$0xff]  ;;  %511 = vmatpush.msra.mxu3 %v401_v46  ;;  %v301_v53 = vld [vmem:[%s1476_s3 + $0x20] sm:$0xff]  ;;  %492 = vmatpush.msra.mxu2 %v367_v48  ;;  %v350_v25 = vld [vmem:[%s1476_s3 + $0x1a8] sm:$0xff] }
  0x2d   : > { %v399_v50 = vld [vmem:[%s1476_s3 + $0x330] sm:$0xff]  ;;  %471 = vmatpush.msra.mxu1 %v337_v47  ;;  %452 = vmatpush.msra.mxu0 %v303_v49  ;;  %v397_v54 = vld [vmem:[%s1476_s3 + $0x320] sm:$0xff]  ;;  %v378_v26 = vld [vmem:[%s1476_s3 + $0x288] sm:$0xff] }
  0x2e   : > { %v335_v51 = vld [vmem:[%s1476_s3 + $0x130] sm:$0xff]  ;;  %v333_v55 = vld [vmem:[%s1476_s3 + $0x120] sm:$0xff]  ;;  %512 = vmatpush.msra.mxu3 %v399_v50  ;;  %493 = vmatpush.msra.mxu2 %v365_v52  ;;  %v412_v27 = vld [vmem:[%s1476_s3 + $0x398] sm:$0xff] }
  0x2f   : > { %472 = vmatpush.msra.mxu1 %v335_v51  ;;  %v363_v56 = vld [vmem:[%s1476_s3 + $0x210] sm:$0xff]  ;;  %453 = vmatpush.msra.mxu0 %v301_v53  ;;  %v361_v60 = vld [vmem:[%s1476_s3 + $0x200] sm:$0xff]  ;;  %v314_v28 = vld [vmem:[%s1476_s3 + $0x88] sm:$0xff] }
  0x30   : > { %v299_v57 = vld [vmem:[%s1476_s3 + $0x10] sm:$0xff]  ;;  %513 = vmatpush.msra.mxu3 %v397_v54  ;;  %v297_v61 = vld [vmem:[%s1476_s3] sm:$0xff]  ;;  %494 = vmatpush.msra.mxu2 %v363_v56  ;;  %v348_v29 = vld [vmem:[%s1476_s3 + $0x198] sm:$0xff] }
  0x31   : > { %v395_v58 = vld [vmem:[%s1476_s3 + $0x310] sm:$0xff]  ;;  %473 = vmatpush.msra.mxu1 %v333_v55  ;;  %454 = vmatpush.msra.mxu0 %v299_v57  ;;  %v393_v63 = vld [vmem:[%s1476_s3 + $0x300] sm:$0xff]  ;;  %v376_v30 = vld [vmem:[%s1476_s3 + $0x278] sm:$0xff] }
  0x32   : > { %v331_v59 = vld [vmem:[%s1476_s3 + $0x110] sm:$0xff]  ;;  %514 = vmatpush.msra.mxu3 %v395_v58  ;;  %495 = vmatpush.msra.mxu2 %v361_v60  ;;  %v329_v3 = vld [vmem:[%s1476_s3 + $0x100] sm:$0xff]  ;;  %v410_v31 = vld [vmem:[%s1476_s3 + $0x388] sm:$0xff] }
  0x33   : > { %474 = vmatpush.msra.mxu1 %v331_v59  ;;  %455 = vmatpush.msra.mxu0 %v297_v61  ;;  %v312_v32 = vld [vmem:[%s1476_s3 + $0x78] sm:$0xff]  ;;  %v346_v33 = vld [vmem:[%s1476_s3 + $0x188] sm:$0xff]  ;;  %v1329_v38 = vld [vmem:[%s276_s13] sm:$0xf]  ;;  %s1437_s13 = sshll.u32 %s270_s29, 2 }
  0x34   : > { %560 = vmatpush.msrb.mxu2 %v392_v62  ;;  %515 = vmatpush.msra.mxu3 %v393_v63  ;;  %v374_v34 = vld [vmem:[%s1476_s3 + $0x268] sm:$0xff]  ;;  %v408_v35 = vld [vmem:[%s1476_s3 + $0x378] sm:$0xff]  ;;  %v429_v45 = vperm.slane %v1329_v38, 2  ;;  %v427_v49 = vperm.slane %v1329_v38, 0  ;;  %v430_v51 = vperm.slane %v1329_v38, 3  ;;  %v428_v55 = vperm.slane %v1329_v38, 1 }
  0x35   : > { %520 = vmatpush.msrb.mxu0 %v328_v0  ;;  %475 = vmatpush.msra.mxu1 %v329_v3  ;;  %v310_v36 = vld [vmem:[%s1476_s3 + $0x68] sm:$0xff]  ;;  %v344_v37 = vld [vmem:[%s1476_s3 + $0x178] sm:$0xff]  ;;  %s272_s25 = scalar_lea.vmem [#allocation2], %s1437_s13 }
  0x36   : > { %580 = vmatpush.msrb.mxu3 %v424_v1  ;;  %561 = vmatpush.msrb.mxu2 %v390_v2  ;;  %v372_v39 = vld [vmem:[%s1476_s3 + $0x258] sm:$0xff]  ;;  %v406_v40 = vld [vmem:[%s1476_s3 + $0x368] sm:$0xff]  ;;  %s717_s10 = sshll.u32 %s272_s25, 4  ;;  %s718_s10 = int_to_ptr.vmem [resolvable:$true] %s717_s10 }
  0x37   : > { %521 = vmatpush.msrb.mxu0 %v326_v4  ;;  %540 = vmatpush.msrb.mxu1 %v360_v5  ;;  %v308_v41 = vld [vmem:[%s1476_s3 + $0x58] sm:$0xff]  ;;  %v342_v42 = vld [vmem:[%s1476_s3 + $0x168] sm:$0xff]  ;;  %v425_v5 = vld [vmem:[%s1477_s4] sm:$0x3] }
  0x38   : > { %562 = vmatpush.msrb.mxu2 %v388_v6  ;;  %581 = vmatpush.msrb.mxu3 %v422_v7  ;;  %v370_v43 = vld [vmem:[%s1476_s3 + $0x248] sm:$0xff]  ;;  %v404_v44 = vld [vmem:[%s1476_s3 + $0x358] sm:$0xff]  ;;  %v436_v6 = vperm.slane %v425_v5, 0 }
  0x39   : > { %522 = vmatpush.msrb.mxu0 %v324_v8  ;;  %541 = vmatpush.msrb.mxu1 %v358_v9  ;;  %v306_v46 = vld [vmem:[%s1476_s3 + $0x48] sm:$0xff]  ;;  %v340_v47 = vld [vmem:[%s1476_s3 + $0x158] sm:$0xff] }
  0x3a   : > { %563 = vmatpush.msrb.mxu2 %v386_v10  ;;  %582 = vmatpush.msrb.mxu3 %v420_v11  ;;  %v368_v48 = vld [vmem:[%s1476_s3 + $0x238] sm:$0xff]  ;;  %v402_v50 = vld [vmem:[%s1476_s3 + $0x348] sm:$0xff] }
  0x3b   : > { %523 = vmatpush.msrb.mxu0 %v322_v12  ;;  %542 = vmatpush.msrb.mxu1 %v356_v13  ;;  %v304_v52 = vld [vmem:[%s1476_s3 + $0x38] sm:$0xff]  ;;  %v338_v53 = vld [vmem:[%s1476_s3 + $0x148] sm:$0xff] }
  0x3c   : > { %564 = vmatpush.msrb.mxu2 %v384_v14  ;;  %583 = vmatpush.msrb.mxu3 %v418_v15  ;;  %v366_v54 = vld [vmem:[%s1476_s3 + $0x228] sm:$0xff]  ;;  %v400_v56 = vld [vmem:[%s1476_s3 + $0x338] sm:$0xff]  ;;  %v437_v14 = vperm.slane %v425_v5, 1  ;;  %v294_v15 = vld [vmem:[%s286_s14] sm:$0x77]  ;;  %s705_s14 = scalar_lea.sflag [#allocation3], %s270_s29 }
  0x3d   : > { %524 = vmatpush.msrb.mxu0 %v320_v16  ;;  %543 = vmatpush.msrb.mxu1 %v354_v17  ;;  %v302_v57 = vld [vmem:[%s1476_s3 + $0x28] sm:$0xff]  ;;  %v336_v58 = vld [vmem:[%s1476_s3 + $0x138] sm:$0xff] }
  0x3e   : > { %565 = vmatpush.msrb.mxu2 %v382_v18  ;;  %584 = vmatpush.msrb.mxu3 %v416_v19  ;;  %v364_v59 = vld [vmem:[%s1476_s3 + $0x218] sm:$0xff]  ;;  %v398_v60 = vld [vmem:[%s1476_s3 + $0x328] sm:$0xff]  ;;  %v295_v18 = vunpack.c.l.bf16 %v294_v15 }
  0x3f   : > { %525 = vmatpush.msrb.mxu0 %v318_v20  ;;  %544 = vmatpush.msrb.mxu1 %v352_v21  ;;  %v300_v61 = vld [vmem:[%s1476_s3 + $0x18] sm:$0xff]  ;;  %v334_v62 = vld [vmem:[%s1476_s3 + $0x128] sm:$0xff] }
  0x40   : > { %566 = vmatpush.msrb.mxu2 %v380_v22  ;;  %585 = vmatpush.msrb.mxu3 %v414_v23  ;;  %v362_v63 = vld [vmem:[%s1476_s3 + $0x208] sm:$0xff]  ;;  %v396_v0 = vld [vmem:[%s1476_s3 + $0x318] sm:$0xff] }
  0x41   : > { %526 = vmatpush.msrb.mxu0 %v316_v24  ;;  %545 = vmatpush.msrb.mxu1 %v350_v25  ;;  %v298_v1 = vld [vmem:[%s1476_s3 + $0x8] sm:$0xff]  ;;  %v332_v2 = vld [vmem:[%s1476_s3 + $0x118] sm:$0xff] }
  0x42   : > { %567 = vmatpush.msrb.mxu2 %v378_v26  ;;  %586 = vmatpush.msrb.mxu3 %v412_v27  ;;  %v394_v3 = vld [vmem:[%s1476_s3 + $0x308] sm:$0xff]  ;;  %v296_v27 = vunpack.c.h.bf16 %v294_v15 }
  0x43   : > { %527 = vmatpush.msrb.mxu0 %v314_v28  ;;  %546 = vmatpush.msrb.mxu1 %v348_v29  ;;  %v330_v4 = vld [vmem:[%s1476_s3 + $0x108] sm:$0xff] }
  0x44   : > { %568 = vmatpush.msrb.mxu2 %v376_v30  ;;  %587 = vmatpush.msrb.mxu3 %v410_v31  ;;  %v606_v31 = vld [vmem:[%s1478_s5] sm:$0x3] }
  0x45   : > { %528 = vmatpush.msrb.mxu0 %v312_v32  ;;  %547 = vmatpush.msrb.mxu1 %v346_v33  ;;  %v608_v32 = vperm.slane %v606_v31, 0 }
  0x46   : > { %569 = vmatpush.msrb.mxu2 %v374_v34  ;;  %588 = vmatpush.msrb.mxu3 %v408_v35  ;;  %v609_v34 = vperm.slane %v606_v31, 1 }
  0x47   : > { %529 = vmatpush.msrb.mxu0 %v310_v36  ;;  %548 = vmatpush.msrb.mxu1 %v344_v37 }
  0x48   : > { %570 = vmatpush.msrb.mxu2 %v372_v39  ;;  %589 = vmatpush.msrb.mxu3 %v406_v40 }
  0x49   : > { %530 = vmatpush.msrb.mxu0 %v308_v41  ;;  %549 = vmatpush.msrb.mxu1 %v342_v42 }
  0x4a   : > { %571 = vmatpush.msrb.mxu2 %v370_v43  ;;  %590 = vmatpush.msrb.mxu3 %v404_v44 }
  0x4b   : > { %496 = vmatmul.f32.vlgmr.msra.gmra.mxu2 %v429_v45  ;;  %531 = vmatpush.msrb.mxu0 %v306_v46 }
  0x4c   : > { %550 = vmatpush.msrb.mxu1 %v340_v47  ;;  %572 = vmatpush.msrb.mxu2 %v368_v48 }
  0x4d   : > { %591 = vmatpush.msrb.mxu3 %v402_v50  ;;  %456 = vmatmul.f32.vlgmr.msra.gmra.mxu0 %v427_v49 }
  0x4e   : > { %516 = vmatmul.f32.vlgmr.msra.gmra.mxu3 %v430_v51  ;;  %532 = vmatpush.msrb.mxu0 %v304_v52 }
  0x4f   : > { %551 = vmatpush.msrb.mxu1 %v338_v53  ;;  %573 = vmatpush.msrb.mxu2 %v366_v54 }
  0x50   : > { %592 = vmatpush.msrb.mxu3 %v400_v56  ;;  %476 = vmatmul.f32.vlgmr.msra.gmra.mxu1 %v428_v55 }
  0x51   : > { %533 = vmatpush.msrb.mxu0 %v302_v57  ;;  %552 = vmatpush.msrb.mxu1 %v336_v58 }
  0x52   : > { %574 = vmatpush.msrb.mxu2 %v364_v59  ;;  %593 = vmatpush.msrb.mxu3 %v398_v60 }
  0x53   : > { %534 = vmatpush.msrb.mxu0 %v300_v61  ;;  %553 = vmatpush.msrb.mxu1 %v334_v62 }
  0x54   : > { %575 = vmatpush.msrb.mxu2 %v362_v63  ;;  %594 = vmatpush.msrb.mxu3 %v396_v0  ;;  %v288_v63 = vld [vmem:[%s281_s20] sm:$0x77] }
  0x55   : > { %576 = vmatmul.f32.vlgmr.msrb.gmra.mxu2 %v429_v45  ;;  %535 = vmatpush.msrb.mxu0 %v298_v1  ;;  %v291_v5 = vunpack.c.h.bf16 %v288_v63 }
  0x56   : > { %554 = vmatpush.msrb.mxu1 %v332_v2  ;;  %595 = vmatpush.msrb.mxu3 %v394_v3  ;;  %v289_v2 = vld [vmem:[%s281_s20 + $0x8] sm:$0x77] }
  0x57   : > { %536 = vmatmul.f32.vlgmr.msrb.gmra.mxu0 %v427_v49  ;;  %596 = vmatmul.f32.vlgmr.msrb.gmra.mxu3 %v430_v51 }
  0x58   : > { %555 = vmatpush.msrb.mxu1 %v330_v4  ;;  %v290_v4 = vunpack.c.l.bf16 %v288_v63 }
  0x59   : > { %556 = vmatmul.f32.vlgmr.msrb.gmra.mxu1 %v428_v55 }
  0xca   : > { %v457_v7 = vpop.f32.mrf.mxu0 }
  0xcb   : > { %v458_v8 = vadd.f32 %v457_v7, %v436_v6  ;;  %v292_v7 = vunpack.c.l.bf16 %v289_v2 }
  0xcd   : > { %v477_v9 = vpop.f32.mrf.mxu1 }
  0xce   : > { %v478_v10 = vadd.f32 %v477_v9, %v458_v8  ;;  %v497_v11 = vpop.f32.mrf.mxu2  ;;  %v293_v8 = vunpack.c.h.bf16 %v289_v2 }
  0xd0   : > { %v498_v12 = vadd.f32 %v497_v11, %v478_v10 }
  0xd1   : > { %v517_v13 = vpop.f32.mrf.mxu3 }
  0xd2   : > { %v518_v16 = vadd.f32 %v517_v13, %v498_v12 }
  0xd4   : > { %v537_v17 = vpop.f32.mrf.mxu0  ;;  %v600_v19 = vperm.slane %v518_v16, 0 }
  0xd5   : > { %v538_v20 = vadd.f32 %v537_v17, %v437_v14 }
  0xd6   : > { %v557_v21 = vpop.f32.mrf.mxu1  ;;  %v602_v24 = vadd.f32 %v600_v19, %v295_v18 }
  0xd7   : > { %v558_v22 = vadd.f32 %v557_v21, %v538_v20 }
  0xd8   : > { %v577_v23 = vpop.f32.mrf.mxu2  ;;  %858 = vtanh.f32 %v602_v24 }
  0xd9   : > { %v578_v25 = vadd.f32 %v577_v23, %v558_v22 }
  0xda   : > { %v597_v26 = vpop.f32.mrf.mxu3 }
  0xdb   : > { %v598_v28 = vadd.f32 %v597_v26, %v578_v25 }
  0xdd   : > { %v601_v29 = vperm.slane %v598_v28, 0 }
  0xde   : > { %v859_v33 = vpop.eup %858 }
  0xdf   : > { %v603_v30 = vadd.f32 %v601_v29, %v296_v27  ;;  %v612_v35 = vmul.f32 %v859_v33, %v608_v32 }
  0xe1   : > { %860 = vtanh.f32 %v603_v30  ;;  %v615_v38 = vsel %vm614_vm0, %v612_v35, 0.0 }
  0xe7   : > { %v861_v36 = vpop.eup %860 }
  0xe8   : > { %v613_v37 = vmul.f32 %v861_v36, %v609_v34 }
  0xea   : > { %v617_v39 = vsel %vm616_vm1, %v613_v37, 0.0 }
  0xeb   : > { %v618_v40 = vadd.f32 %v617_v39, %v615_v38 }
  0xed   : > { %619 = vadd.xlane.f32.xlu0 %v618_v40  ;;  %v699_v40 = vlaneseq }
  0xef   : > { %vm701_vm9 = vcmp.lt.s32.totalorder %v699_v40, 512 }
 0x160   : > { %v620_v41 = vpop.xlane.xlu0 %619 }
 0x161   : > { %v621_v42 = vsel %vm614_vm0, %v620_v41, -inf }
 0x162   : > { %v622_v43 = vrot.slane %v621_v42, 4 }
 0x164   : > { %v623_v44 = vmax.f32 %v621_v42, %v622_v43 }
 0x166   : > { %v624_v45 = vrot.slane %v623_v44, 2 }
 0x168   : > { %v625_v46 = vmax.f32 %v623_v44, %v624_v45 }
 0x16a   : > { %v626_v47 = vrot.slane %v625_v46, 1 }
 0x16c   : > { %v627_v48 = vmax.f32 %v625_v46, %v626_v47 }
 0x16e   : > { %v628_v49 = vsub.f32 %v620_v41, %v627_v48 }
 0x170   : > { %v629_v50 = vmul.f32 1.442695, %v628_v49 }
 0x172   : > { %862 = vpow2.f32 %v629_v50 }
 0x178   : > { %v863_v51 = vpop.eup %862 }
 0x179   : > { %v631_v52 = vsel %vm614_vm0, %v863_v51, 0.0 }
 0x17a   : > { %v632_v53 = vrot.slane %v631_v52, 4 }
 0x17c   : > { %v633_v54 = vadd.f32 %v632_v53, %v631_v52 }
 0x17e   : > { %v634_v55 = vrot.slane %v633_v54, 2 }
 0x180   : > { %v635_v56 = vadd.f32 %v634_v55, %v633_v54 }
 0x182   : > { %v636_v57 = vrot.slane %v635_v56, 1 }
 0x184   : > { %v637_v58 = vadd.f32 %v636_v57, %v635_v56 }
 0x186   : > { %864 = vrcp.f32 %v637_v58  ;;  %v649_v62 = vand.u32 2147483648, %v637_v58  ;;  %v647_v1 = vand.u32 2147483647, %v637_v58  ;;  %vm643_vm3 = vweird.f32 %v637_v58 }
 0x188   : > { %v650_v6 = vor.u32 1.1754944e-38, %v649_v62  ;;  %vm648_vm5 = vcmp.eq.f32.partialorder %v647_v1, 8.507059e+37 }
 0x18c   : > { %v865_v59 = vpop.eup %864 }
 0x18d   : > { %v639_v60 = vmul.f32 %v865_v59, %v637_v58  ;;  %vm644_vm2 = vweird.f32 %v865_v59 }
 0x18e   : > { %vm645_vm4 = vmor %vm643_vm3, %vm644_vm2 }
 0x18f   : > { %v640_v61 = vsub.f32 1.0, %v639_v60 }
 0x191   : > { %v641_v0 = vmul.f32 %v865_v59, %v640_v61 }
 0x193   : > { %v642_v3 = vadd.f32 %v865_v59, %v641_v0 }
 0x195   : > { %v646_v9 = vsel %vm645_vm4, %v865_v59, %v642_v3 }
 0x196   : > { %v651_v10 = vsel %vm648_vm5, %v650_v6, %v646_v9 }
 0x197   : > { %v652_v11 = vmul.f32 %v863_v51, %v651_v10 }
 0x199   : > { %v653_v12 = vmul.f32 %v652_v11, %v290_v4  ;;  %v654_v13 = vmul.f32 %v652_v11, %v291_v5  ;;  %v655_v14 = vmul.f32 %v652_v11, %v292_v7  ;;  %v656_v15 = vmul.f32 %v652_v11, %v293_v8 }
 0x19b   : > { %v657_v16 = vsel %vm614_vm0, %v653_v12, 0.0  ;;  %v664_v17 = vsel %vm614_vm0, %v654_v13, 0.0  ;;  %v671_v18 = vsel %vm614_vm0, %v655_v14, 0.0  ;;  %v678_v19 = vsel %vm614_vm0, %v656_v15, 0.0 }
 0x19c   : > { %v658_v20 = vrot.slane %v657_v16, 4  ;;  %v665_v21 = vrot.slane %v664_v17, 4  ;;  %v672_v22 = vrot.slane %v671_v18, 4  ;;  %v679_v23 = vrot.slane %v678_v19, 4 }
 0x19e   : > { %v659_v24 = vadd.f32 %v658_v20, %v657_v16  ;;  %v666_v25 = vadd.f32 %v665_v21, %v664_v17  ;;  %v673_v26 = vadd.f32 %v672_v22, %v671_v18  ;;  %v680_v27 = vadd.f32 %v679_v23, %v678_v19 }
 0x1a0   : > { %v660_v28 = vrot.slane %v659_v24, 2  ;;  %v667_v29 = vrot.slane %v666_v25, 2  ;;  %v674_v30 = vrot.slane %v673_v26, 2  ;;  %v681_v31 = vrot.slane %v680_v27, 2 }
 0x1a2   : > { %v661_v32 = vadd.f32 %v660_v28, %v659_v24  ;;  %v668_v33 = vadd.f32 %v667_v29, %v666_v25  ;;  %v675_v34 = vadd.f32 %v674_v30, %v673_v26  ;;  %v682_v35 = vadd.f32 %v681_v31, %v680_v27 }
 0x1a4   : > { %v662_v36 = vrot.slane %v661_v32, 1  ;;  %v669_v37 = vrot.slane %v668_v33, 1  ;;  %v676_v38 = vrot.slane %v675_v34, 1  ;;  %v683_v39 = vrot.slane %v682_v35, 1 }
 0x1a6   : > { %v670_v41 = vadd.f32 %v669_v37, %v668_v33  ;;  %v677_v42 = vadd.f32 %v676_v38, %v675_v34  ;;  %v684_v43 = vadd.f32 %v683_v39, %v682_v35  ;;  %v663_v44 = vadd.f32 %v662_v36, %v661_v32 }
 0x1a8   : > { %v689_v45 = vrot.slane %v670_v41, 7  ;;  %v690_v46 = vrot.slane %v677_v42, 6  ;;  %v691_v47 = vrot.slane %v684_v43, 5 }
 0x1aa   : > { %v693_v48 = vsel %vm692_vm6, %v663_v44, %v689_v45  ;;  %v695_v49 = vsel %vm694_vm7, %v690_v46, %v691_v47 }
 0x1ab   : > { %v697_v50 = vsel %vm696_vm8, %v693_v48, %v695_v49 }
 0x1ac   : > { %703 = vst.msk [vmem:[%s272_s25] sm:$0xf] %vm701_vm9, %v697_v50 }
 0x1ad   : > { %893 = shalt.err (!%p890_p3)
}
 0x1ae   : > { %819 = dma.vmem_to_hbm [thread:$0]  (%p1003_p5), %s718_s10, 64, %s720_s12, %s705_s14  }
 0x1af PF: > { %p825_p4 = scmp.ge.s32.totalorder %s928_s24, 2  ;;  %s731_s29 = sand.u32 1, %s916_s21  }
 0x1b0   : > { %s732_s26 = scalar_lea.sflag [#allocation3], %s731_s29 }
 0x1b1   : > { %p822_p7 = pnand %p825_p4, %p1007_p6 }
 0x1b3   : > { %p823_p8 = pneg %p822_p7 }
 0x1b5   : > { %911 = dma.done.wait (%p823_p8), %s732_s26, 64  }
 0x1b6   : > { %913 = vsyncadd (%p823_p8), %s732_s26, 4294967232  ;;  %p16_p9 = scmp.ge.s32.totalorder %s990_s27, 4   ;;  %s1482_s21 = smov %s920_s22 }
 0x1b7   : > { %s1483_s22 = smov %s924_s23  ;;  %s1484_s23 = smov %s1001_s30 }
 0x1b8   : > { %s1485_s24 = smov %s990_s27  ;;  %18 = sbr.rel (!%p16_p9) target bundleno = 3 (0x3), region = 85 }
 0x1bd   :  { %738 = vsyncpa [#allocation3], 1 }
 0x1be   :  { %740 = vsyncpa [#allocation3 + $0x1], 1 }

</bundles_post_ra>
